<compile_context>
chip_gen: v6e
topology: v6e:2x2x1
jax: 0.10.0
libtpu: 0.0.40
codegen_flags: <defaults>
</compile_context>

<pallas_src>
import jax
import jax.numpy as jnp
from jax.experimental import pallas as pl
from jax.experimental.pallas import tpu as pltpu


_LANE = 128          # rows per output lane-group (lane-dense output tile)
_GROUP_ALIGN = 8     # row-groups per block must be a multiple of 8 (sublane rule),
                     # unless a single block covers all groups.


def _round_up(a, b):
    return (a + b - 1) // b * b


def _cdiv(a, b):
    return (a + b - 1) // b


def _vmem_capacity_bytes():
    """Physical VMEM of the local TPU; conservative fallback if the query fails."""
    try:
        info = pltpu.get_tpu_info()
        cap = int(getattr(info, "vmem_capacity_bytes", 0) or 0)
        if cap > 0:
            return cap
    except Exception:
        pass
    return 64 * 1024 * 1024   # v7x physical VMEM -- safe lower bound everywhere


def _parametric_kernel(alpha_ref, x_ref, w_ref, o_ref):
    # x_ref: (gb, 128, F) VMEM   w_ref: (1, 1, F) VMEM   alpha_ref: (1,) SMEM
    # o_ref: (gb, 128) VMEM  (lane-dense -> unmasked vector stores)
    # HBM-streaming-bound: VPU multiply + XLU lane reduction + EUP exp are filler
    # in spare issue slots while the next x tile DMAs in.
    s = jnp.sum(x_ref[...] * w_ref[...], axis=-1)                 # (gb, 128) f32
    o_ref[...] = (alpha_ref[0] * jnp.exp(s)).astype(o_ref.dtype)


def parametric_net_forward(x, W, alpha, *, block_rows=None):
    """score = alpha * exp(x @ W).   x:(N,F) f32, W:(F,1), alpha:(1,)  ->  (N,1)."""
    N, F = x.shape
    assert W.shape == (F, 1), W.shape

    # --- VMEM budgeting (lane padding of the minor dim included) -------------
    f_pad = _round_up(F, _LANE)                      # minor dim is lane-padded in VMEM
    group_bytes = _LANE * f_pad * 4                  # one (128, F) row-group, f32, padded
    vmem_cap = _vmem_capacity_bytes()
    vmem_limit = int(min((vmem_cap * 3) // 4, 96 * 1024 * 1024))
    x_buffer_budget = vmem_limit // 4                # per x buffer (double-buffered => /2,
                                                     #  keep ~half the limit as headroom)

    if 2 * _GROUP_ALIGN * group_bytes > vmem_limit:
        # TODO(synk): add a feature-dim (K) tiling path (grid axis over F, f32
        # accumulator scratch, pl.when init/finalize) for very wide feature sets.
        raise NotImplementedError(
            f"num_features={F} too large for a single feature block within VMEM "
            f"(limit={vmem_limit} bytes).")

    gb_budget = max(_GROUP_ALIGN,
                    (x_buffer_budget // group_bytes) // _GROUP_ALIGN * _GROUP_ALIGN)

    if block_rows is not None:
        block_rows = int(block_rows)
        if block_rows <= 0:
            raise ValueError(f"block_rows must be positive, got {block_rows}")
        # Round up to a multiple of 1024 rows (8 lane-groups), then clamp to VMEM.
        gb_req = _round_up(block_rows, _GROUP_ALIGN * _LANE) // _LANE
        gb_target = min(gb_req, gb_budget)
    else:
        gb_target = gb_budget

    # --- Minimal padding: only to a multiple of 128 rows ---------------------
    n_pad = _round_up(N, _LANE)
    if n_pad != N:
        # Padded rows compute alpha*exp(0) and are sliced off below -- benign.
        x = jnp.pad(x, ((0, n_pad - N), (0, 0)))
    G = n_pad // _LANE                               # total 128-row groups

    # Prefer >=2 grid steps so v7x can split row tiles across its two TensorCores
    # (no-op on single-core v5e/v6e); then clamp to the actual number of groups.
    gb = min(gb_target, max(_GROUP_ALIGN, _round_up(_cdiv(G, 2), _GROUP_ALIGN)))
    if gb >= G:
        gb = G                                       # one block covers everything
    num_blocks = _cdiv(G, gb)                        # ragged tail -> boundary block

    x3 = x.reshape(G, _LANE, F)                      # contiguous row-major reshape: free
    w_row = W.reshape(1, 1, F)                       # (F,1) -> broadcastable (1,1,F)

    out2 = pl.pallas_call(
        _parametric_kernel,
        out_shape=jax.ShapeDtypeStruct((G, _LANE), x.dtype),
        grid_spec=pltpu.PrefetchScalarGridSpec(
            num_scalar_prefetch=0,
            grid=(num_blocks,),
            in_specs=[
                # alpha: tiny scalar parameter, keep in SMEM (untiled).
                pl.BlockSpec(memory_space=pltpu.SMEM),
                # x: large row tile, full feature dim.
                pl.BlockSpec((gb, _LANE, F), lambda i: (i, 0, 0)),
                # W: full, same (resident) block every grid step.
                pl.BlockSpec((1, 1, F), lambda i: (0, 0, 0)),
            ],
            # Lane-dense output slab (last dim = 128 -> unmasked vector stores).
            out_specs=pl.BlockSpec((gb, _LANE), lambda i: (i, 0)),
        ),
        compiler_params=pltpu.CompilerParams(
            dimension_semantics=("parallel",),   # v7x: shard row tiles over both TCs
            vmem_limit_bytes=vmem_limit,
        ),
    )(alpha, x3, w_row)

    return out2.reshape(n_pad, 1)[:N]


def init_parametric_net(key, num_features, init_alpha=1.0, is_beta_used=True):
    """Deterministic synthetic parameter init (mirrors ParametricNet.__init__)."""
    # TODO(synk): PyTorch applies opt.initialization(init_method, W); plain randn used here.
    wkey, _ = jax.random.split(key)
    W = jax.random.normal(wkey, (num_features, 1), dtype=jnp.float32)
    # Matches the PyTorch code verbatim: alpha = [1.0]/init_alpha, beta = [1.001]/init_alpha.
    alpha = jnp.array([1.0], dtype=jnp.float32) / init_alpha
    params = {"W": W, "alpha": alpha}
    if is_beta_used:
        # beta is a parameter but unused in forward().
        params["beta"] = jnp.array([1.001], dtype=jnp.float32) / init_alpha
    return params


if __name__ == "__main__":
    key = jax.random.PRNGKey(0)
    num_features = 32
    batch = 200   # not a multiple of 128: exercises the minimal-padding path

    pkey, xkey = jax.random.split(key)
    params = init_parametric_net(pkey, num_features, init_alpha=1.0, is_beta_used=True)
    x = jax.random.normal(xkey, (batch, num_features), dtype=jnp.float32)

    out = parametric_net_forward(x, params["W"], params["alpha"])
    out = jax.block_until_ready(out)

    # Reference in plain JAX (elementwise f32 multiply-reduce: avoids any MXU
    # bf16 rounding in the reference itself).
    ref = params["alpha"] * jnp.exp(
        jnp.sum(x * params["W"][:, 0], axis=-1, keepdims=True))
    assert out.shape == (batch, 1)
    assert jnp.allclose(out, ref, rtol=1e-5, atol=1e-5), "mismatch vs reference"

    # Also check a 128-aligned batch (zero-copy path, no padding).
    x2 = jax.random.normal(jax.random.PRNGKey(1), (256, num_features), dtype=jnp.float32)
    out2 = jax.block_until_ready(parametric_net_forward(x2, params["W"], params["alpha"]))
    ref2 = params["alpha"] * jnp.exp(
        jnp.sum(x2 * params["W"][:, 0], axis=-1, keepdims=True))
    assert out2.shape == (256, 1)
    assert jnp.allclose(out2, ref2, rtol=1e-5, atol=1e-5), "mismatch vs reference (aligned)"

    print("KERNEL_OK")
</pallas_src>

<mosaic_0001>
module attributes {stable_mosaic.version = 11 : i64} {
  func.func @_parametric_kernel(%arg0: i32, %arg1: memref<1xf32, #tpu.memory_space<smem>>, %arg2: memref<2x128x32xf32, #tpu.memory_space<vmem>>, %arg3: memref<1x1x32xf32, #tpu.memory_space<vmem>>, %arg4: memref<2x128xf32, #tpu.memory_space<vmem>>) attributes {dimension_semantics = [#tpu.dimension_semantics<parallel>], iteration_bounds = array<i64: 1>, scalar_prefetch = 0 : i64, scratch_operands = 0 : i64, tpu.core_type = #tpu.core_type<tc>, window_params = [{transform_indices = @transform_0, window_bounds = array<i64: 1>}, {transform_indices = @transform_1, window_bounds = array<i64: 2, 128, 32>}, {pipeline_mode = #tpu.pipeline_mode<synchronous>, transform_indices = @transform_2, window_bounds = array<i64: 1, 1, 32>}, {transform_indices = @transform_3, window_bounds = array<i64: 2, 128>}]} {
    %c0 = arith.constant 0 : index
    %c0_0 = arith.constant 0 : index
    %c0_1 = arith.constant 0 : index
    %0 = vector.load %arg2[%c0, %c0_0, %c0_1] : memref<2x128x32xf32, #tpu.memory_space<vmem>>, vector<2x128x32xf32>
    %c0_2 = arith.constant 0 : index
    %c0_3 = arith.constant 0 : index
    %c0_4 = arith.constant 0 : index
    %1 = vector.load %arg3[%c0_2, %c0_3, %c0_4] : memref<1x1x32xf32, #tpu.memory_space<vmem>>, vector<1x1x32xf32>
    %2 = vector.broadcast %1 : vector<1x1x32xf32> to vector<2x128x32xf32>
    %3 = arith.mulf %0, %2 : vector<2x128x32xf32>
    %cst = arith.constant dense<0.000000e+00> : vector<2x128xf32>
    %4 = vector.multi_reduction <add>, %3, %cst [2] : vector<2x128x32xf32> to vector<2x128xf32>
    %c0_5 = arith.constant 0 : index
    %5 = memref.load %arg1[%c0_5] : memref<1xf32, #tpu.memory_space<smem>>
    %6 = math.exp %4 : vector<2x128xf32>
    %7 = vector.broadcast %5 : f32 to vector<2x128xf32>
    %8 = arith.mulf %7, %6 : vector<2x128xf32>
    %c0_6 = arith.constant 0 : index
    %c0_7 = arith.constant 0 : index
    %9 = vector.load %arg4[%c0_6, %c0_7] : memref<2x128xf32, #tpu.memory_space<vmem>>, vector<2x128xf32>
    tpu.vector_store %arg4[%c0_6, %c0_7], %8 {strides = array<i32>} : memref<2x128xf32, #tpu.memory_space<vmem>>, vector<2x128xf32>,
    return
  }
  func.func @transform_0(%arg0: i32) -> i32 {
    %c0_i32 = arith.constant 0 : i32
    %c0_i32_0 = arith.constant 0 : i32
    return %c0_i32 : i32
  }
  func.func @transform_1(%arg0: i32) -> (i32, i32, i32) {
    %c0_i32 = arith.constant 0 : i32
    %c0_i32_0 = arith.constant 0 : i32
    %c0_i32_1 = arith.constant 0 : i32
    return %arg0, %c0_i32, %c0_i32_0 : i32, i32, i32
  }
  func.func @transform_2(%arg0: i32) -> (i32, i32, i32) {
    %c0_i32 = arith.constant 0 : i32
    %c0_i32_0 = arith.constant 0 : i32
    %c0_i32_1 = arith.constant 0 : i32
    %c0_i32_2 = arith.constant 0 : i32
    return %c0_i32, %c0_i32_0, %c0_i32_1 : i32, i32, i32
  }
  func.func @transform_3(%arg0: i32) -> (i32, i32) {
    %c0_i32 = arith.constant 0 : i32
    %c0_i32_0 = arith.constant 0 : i32
    return %arg0, %c0_i32 : i32, i32
  }
}

</mosaic_0001>

<bundles_post_ra>
// kernel: tpu_custom_call.1
= control target key start
LH: loop header
LB: loop body
LE: loop exit
PB: predicated region body
PF: predicated region fallthrough
CT: control target
= control target key end

     0   :  { %vm87_vm0 = vcmask 261120   ;;  %s970_s0 = inlined_call_operand.<no memory space> [shape: f32[1], index: 0, kind: input, shape index: {}]   ;;  %s971_s1 = inlined_call_operand.vmem [shape: f32[2,128,32], index: 1, kind: input, shape index: {}]   ;;  %s972_s2 = inlined_call_operand.vmem [shape: f32[1,1,32], index: 2, kind: input, shape index: {}]   ;;  %s973_s3 = inlined_call_operand.hbm [shape: f32[2,128], index: 3, kind: output, shape index: {}]  }
   0x1   :  { %v32_v0 = vld [vmem:[%s971_s1 + $0x80] sm:$0xff]  ;;  %v33_v5 = vld [vmem:[%s971_s1 + $0x88] sm:$0xff]  ;;  %v34_v9 = vld [vmem:[%s971_s1 + $0x90] sm:$0xff] }
   0x2   :  { %v637_v1 = vld [vmem:[%s972_s2] ss:$0 sm:$0xff]  ;;  %v17_v6 = vld [vmem:[%s971_s1 + $0x8] sm:$0xff]  ;;  %v18_v10 = vld [vmem:[%s971_s1 + $0x10] sm:$0xff] }
   0x3   :  { %v16_v2 = vld [vmem:[%s971_s1] sm:$0xff]  ;;  %v71_v3 = vmul.f32 %v637_v1, %v32_v0  ;;  %v72_v7 = vmul.f32 %v637_v1, %v33_v5  ;;  %v56_v8 = vmul.f32 %v637_v1, %v17_v6  ;;  %v73_v15 = vmul.f32 %v637_v1, %v34_v9  ;;  %v35_v17 = vld [vmem:[%s971_s1 + $0x98] sm:$0xff] }
   0x4   :  { %v55_v4 = vmul.f32 %v637_v1, %v16_v2  ;;  %v57_v16 = vmul.f32 %v637_v1, %v18_v10  ;;  %v19_v18 = vld [vmem:[%s971_s1 + $0x18] sm:$0xff]  ;;  %v74_v21 = vmul.f32 %v637_v1, %v35_v17  ;;  %v36_v23 = vld [vmem:[%s971_s1 + $0xa0] sm:$0xff] }
   0x5   :  { %v136_v11 = vsel %vm87_vm0, %v71_v3, 0.0  ;;  %v139_v13 = vsel %vm87_vm0, %v72_v7, 0.0  ;;  %v91_v14 = vsel %vm87_vm0, %v56_v8, 0.0  ;;  %v142_v19 = vsel %vm87_vm0, %v73_v15, 0.0  ;;  %v20_v24 = vld [vmem:[%s971_s1 + $0x20] sm:$0xff] }
   0x6   :  { %v88_v12 = vsel %vm87_vm0, %v55_v4, 0.0  ;;  %137 = vadd.xlane.f32.xlu1 %v136_v11  ;;  %v94_v20 = vsel %vm87_vm0, %v57_v16, 0.0  ;;  %v58_v22 = vmul.f32 %v637_v1, %v19_v18 }
   0x7   :  { %89 = vadd.xlane.f32.xlu0 %v88_v12 }
   0xa   :  { %140 = vadd.xlane.f32.xlu1 %v139_v13 }
   0xb   :  { %92 = vadd.xlane.f32.xlu0 %v91_v14 }
   0xc   :  { %9 = vsyncpa [#allocation4], 0  ;;  %v145_v25 = vsel %vm87_vm0, %v74_v21, 0.0  ;;  %v97_v26 = vsel %vm87_vm0, %v58_v22, 0.0  ;;  %v75_v27 = vmul.f32 %v637_v1, %v36_v23  ;;  %v59_v28 = vmul.f32 %v637_v1, %v20_v24  ;;  %v37_v29 = vld [vmem:[%s971_s1 + $0xa8] sm:$0xff]  ;;  %v38_v35 = vld [vmem:[%s971_s1 + $0xb0] sm:$0xff] }
   0xd   :  { %v21_v30 = vld [vmem:[%s971_s1 + $0x28] sm:$0xff]  ;;  %v76_v33 = vmul.f32 %v637_v1, %v37_v29  ;;  %v22_v36 = vld [vmem:[%s971_s1 + $0x30] sm:$0xff]  ;;  %v77_v39 = vmul.f32 %v637_v1, %v38_v35  ;;  %v39_v41 = vld [vmem:[%s971_s1 + $0xb8] sm:$0xff]  ;;  %vm325_vm1 = vcmask 130112   ;;  %vm332_vm2 = vcmask 195712  }
   0xe   :  { %143 = vadd.xlane.f32.xlu1 %v142_v19  ;;  %v148_v31 = vsel %vm87_vm0, %v75_v27, 0.0  ;;  %v100_v32 = vsel %vm87_vm0, %v59_v28, 0.0  ;;  %v60_v34 = vmul.f32 %v637_v1, %v21_v30  ;;  %v61_v40 = vmul.f32 %v637_v1, %v22_v36  ;;  %v23_v42 = vld [vmem:[%s971_s1 + $0x38] sm:$0xff]  ;;  %v40_v47 = vld [vmem:[%s971_s1 + $0xc0] sm:$0xff]  ;;  %v41_v53 = vld [vmem:[%s971_s1 + $0xc8] sm:$0xff] }
   0xf   :  { %95 = vadd.xlane.f32.xlu0 %v94_v20  ;;  %v151_v37 = vsel %vm87_vm0, %v76_v33, 0.0  ;;  %v154_v43 = vsel %vm87_vm0, %v77_v39, 0.0  ;;  %v78_v45 = vmul.f32 %v637_v1, %v39_v41  ;;  %v62_v46 = vmul.f32 %v637_v1, %v23_v42  ;;  %v24_v48 = vld [vmem:[%s971_s1 + $0x40] sm:$0xff]  ;;  %v25_v54 = vld [vmem:[%s971_s1 + $0x48] sm:$0xff]  ;;  %v42_v59 = vld [vmem:[%s971_s1 + $0xd0] sm:$0xff] }
  0x10   :  { %v103_v38 = vsel %vm87_vm0, %v60_v34, 0.0  ;;  %v106_v44 = vsel %vm87_vm0, %v61_v40, 0.0  ;;  %v79_v51 = vmul.f32 %v637_v1, %v40_v47  ;;  %v63_v52 = vmul.f32 %v637_v1, %v24_v48  ;;  %v26_v60 = vld [vmem:[%s971_s1 + $0x50] sm:$0xff]  ;;  %v43_v2 = vld [vmem:[%s971_s1 + $0xd8] sm:$0xff]  ;;  %v44_v8 = vld [vmem:[%s971_s1 + $0xe0] sm:$0xff] }
  0x11   :  { %v157_v49 = vsel %vm87_vm0, %v78_v45, 0.0  ;;  %v109_v50 = vsel %vm87_vm0, %v62_v46, 0.0  ;;  %v80_v57 = vmul.f32 %v637_v1, %v41_v53  ;;  %v64_v58 = vmul.f32 %v637_v1, %v25_v54  ;;  %v27_v3 = vld [vmem:[%s971_s1 + $0x58] sm:$0xff]  ;;  %v28_v9 = vld [vmem:[%s971_s1 + $0x60] sm:$0xff]  ;;  %v45_v14 = vld [vmem:[%s971_s1 + $0xe8] sm:$0xff] }
  0x12   :  { %146 = vadd.xlane.f32.xlu1 %v145_v25  ;;  %v160_v55 = vsel %vm87_vm0, %v79_v51, 0.0  ;;  %v112_v56 = vsel %vm87_vm0, %v63_v52, 0.0  ;;  %v81_v63 = vmul.f32 %v637_v1, %v42_v59  ;;  %v65_v0 = vmul.f32 %v637_v1, %v26_v60  ;;  %v29_v15 = vld [vmem:[%s971_s1 + $0x68] sm:$0xff]  ;;  %v46_v20 = vld [vmem:[%s971_s1 + $0xf0] sm:$0xff]  ;;  %v31_v27 = vld [vmem:[%s971_s1 + $0x78] sm:$0xff] }
  0x13   :  { %98 = vadd.xlane.f32.xlu0 %v97_v26  ;;  %v163_v61 = vsel %vm87_vm0, %v80_v57, 0.0  ;;  %v115_v62 = vsel %vm87_vm0, %v64_v58, 0.0  ;;  %v82_v6 = vmul.f32 %v637_v1, %v43_v2  ;;  %v66_v7 = vmul.f32 %v637_v1, %v27_v3  ;;  %v30_v21 = vld [vmem:[%s971_s1 + $0x70] sm:$0xff]  ;;  %v47_v26 = vld [vmem:[%s971_s1 + $0xf8] sm:$0xff] }
  0x14   :  { %v166_v4 = vsel %vm87_vm0, %v81_v63, 0.0  ;;  %v118_v5 = vsel %vm87_vm0, %v65_v0, 0.0  ;;  %v83_v12 = vmul.f32 %v637_v1, %v44_v8  ;;  %v67_v13 = vmul.f32 %v637_v1, %v28_v9 }
  0x15   :  { %v169_v10 = vsel %vm87_vm0, %v82_v6, 0.0  ;;  %v121_v11 = vsel %vm87_vm0, %v66_v7, 0.0  ;;  %v84_v18 = vmul.f32 %v637_v1, %v45_v14  ;;  %v68_v19 = vmul.f32 %v637_v1, %v29_v15 }
  0x16   :  { %149 = vadd.xlane.f32.xlu1 %v148_v31  ;;  %v172_v16 = vsel %vm87_vm0, %v83_v12, 0.0  ;;  %v124_v17 = vsel %vm87_vm0, %v67_v13, 0.0  ;;  %v85_v24 = vmul.f32 %v637_v1, %v46_v20  ;;  %v69_v25 = vmul.f32 %v637_v1, %v30_v21 }
  0x17   :  { %101 = vadd.xlane.f32.xlu0 %v100_v32  ;;  %v175_v22 = vsel %vm87_vm0, %v84_v18, 0.0  ;;  %v127_v23 = vsel %vm87_vm0, %v68_v19, 0.0  ;;  %v86_v30 = vmul.f32 %v637_v1, %v47_v26  ;;  %v70_v31 = vmul.f32 %v637_v1, %v31_v27 }
  0x18   :  { %v178_v28 = vsel %vm87_vm0, %v85_v24, 0.0  ;;  %v130_v29 = vsel %vm87_vm0, %v69_v25, 0.0  ;;  %v314_v59 = vlaneseq  ;;  %v806_v14 = vstv %s970_s0  ;;  %s610_s0 = smov [#allocation3]  }
  0x19   :  { %v181_v32 = vsel %vm87_vm0, %v86_v30, 0.0  ;;  %v133_v33 = vsel %vm87_vm0, %v70_v31, 0.0  ;;  %vm339_vm3 = vcmask 261312   ;;  %vm346_vm4 = vcmask 326912   ;;  %s514_s22 = sshll.u32 %s610_s0, 4  ;;  %s515_s22 = int_to_ptr.vmem [resolvable:$true] %s514_s22 }
  0x1a   :  { %152 = vadd.xlane.f32.xlu1 %v151_v37  ;;  %v796_v3 = vand.u32 127, %v314_v59  ;;  %vm353_vm5 = vcmask 392512   ;;  %vm360_vm6 = vcmask 458112   ;;  %vm367_vm7 = vcmask 523712   ;;  %s588_s23 = scalar_lea.vmem %s515_s22, 32  ;;  %p593_p1 = scmp.lt.s32.totalorder %s515_s22, %s515_s22 }
  0x1b   :  { %104 = vadd.xlane.f32.xlu0 %v103_v38  ;;  %vm374_vm8 = vcmask 589312   ;;  %vm381_vm9 = vcmask 654912   ;;  %vm388_vm10 = vcmask 720512   ;;  %vm395_vm11 = vcmask 786112   ;;  %p589_p0 = scmp.ne.s32.totalorder %s515_s22, %s588_s23  ;;  %p594_p2 = scmp.lt.s32.totalorder %s588_s23, %s588_s23 }
  0x1c   :  { %v320_v7 = vadd.s32 4294967288, %v796_v3  ;;  %v327_v9 = vadd.s32 4294967280, %v796_v3  ;;  %v341_v18 = vadd.s32 4294967264, %v796_v3  ;;  %v355_v31 = vadd.s32 4294967248, %v796_v3 }
  0x1d   :  { %vm402_vm12 = vcmask 851712   ;;  %vm409_vm13 = vcmask 917312   ;;  %vm416_vm14 = vcmask 982912   ;;  %vm423_vm15 = vcmask 1048512   ;;  %p595_p3 = por %p594_p2, %p593_p1 }
  0x1e   :  { %155 = vadd.xlane.f32.xlu1 %v154_v43  ;;  %vm504_vm0 = vcmask 1041409  }
  0x1f   :  { %107 = vadd.xlane.f32.xlu0 %v106_v44  ;;  %p596_p4 = pnand %p595_p3, %p589_p0 }
  0x22   :  { %158 = vadd.xlane.f32.xlu1 %v157_v49 }
  0x23   :  { %110 = vadd.xlane.f32.xlu0 %v109_v50 }
  0x26   :  { %161 = vadd.xlane.f32.xlu1 %v160_v55 }
  0x27   :  { %113 = vadd.xlane.f32.xlu0 %v112_v56 }
  0x2a   :  { %164 = vadd.xlane.f32.xlu1 %v163_v61 }
  0x2b   :  { %116 = vadd.xlane.f32.xlu0 %v115_v62 }
  0x2e   :  { %167 = vadd.xlane.f32.xlu1 %v166_v4 }
  0x2f   :  { %119 = vadd.xlane.f32.xlu0 %v118_v5  ;;  %v798_v5 = vshrl.u32 %v314_v59, 7 }
  0x31   :  { %v818_v21 = vsub.s32 %v320_v7, %v798_v5  ;;  %v822_v25 = vsub.s32 %v327_v9, %v798_v5 }
  0x32   :  { %170 = vadd.xlane.f32.xlu1 %v169_v10  ;;  %v334_v10 = vadd.s32 4294967272, %v796_v3 }
  0x33   :  { %122 = vadd.xlane.f32.xlu0 %v121_v11 }
  0x34   :  { %v825_v26 = vsub.s32 %v334_v10, %v798_v5 }
  0x36   :  { %173 = vadd.xlane.f32.xlu1 %v172_v16 }
  0x37   :  { %125 = vadd.xlane.f32.xlu0 %v124_v17  ;;  %v812_v17 = vsub.s32 %v796_v3, %v798_v5 }
  0x3a   :  { %176 = vadd.xlane.f32.xlu1 %v175_v22  ;;  %v348_v22 = vadd.s32 4294967256, %v796_v3 }
  0x3b   :  { %128 = vadd.xlane.f32.xlu0 %v127_v23 }
  0x3e   :  { %179 = vadd.xlane.f32.xlu1 %v178_v28 }
  0x3f   :  { %131 = vadd.xlane.f32.xlu0 %v130_v29 }
  0x42   :  { %182 = vadd.xlane.f32.xlu1 %v181_v32  ;;  %v362_v32 = vadd.s32 4294967240, %v796_v3 }
  0x43   :  { %134 = vadd.xlane.f32.xlu0 %v133_v33 }
  0x8f   :  { %v138_v34 = vpop.xlane.xlu1 %137 }
  0x90   :  { %v90_v35 = vpop.xlane.xlu0 %89  ;;  %v217_v47 = vmul.f32 1.442695, %v138_v34 }
  0x91   :  { %v185_v48 = vmul.f32 1.442695, %v90_v35  ;;  %v830_v35 = vsub.s32 %v341_v18, %v798_v5 }
  0x92   :  { %524 = vpow2.f32 %v217_v47 }
  0x93   :  { %v141_v36 = vpop.xlane.xlu1 %140  ;;  %526 = vpow2.f32 %v185_v48  ;;  %v840_v48 = vsub.s32 %v355_v31, %v798_v5 }
  0x94   :  { %v93_v37 = vpop.xlane.xlu0 %92  ;;  %v219_v49 = vmul.f32 1.442695, %v141_v36  ;;  %v369_v36 = vadd.s32 4294967232, %v796_v3 }
  0x95   :  { %v187_v50 = vmul.f32 1.442695, %v93_v37 }
  0x96   :  { %528 = vpow2.f32 %v219_v49  ;;  %v843_v49 = vsub.s32 %v362_v32, %v798_v5 }
  0x97   :  { %v144_v38 = vpop.xlane.xlu1 %143  ;;  %530 = vpow2.f32 %v187_v50 }
  0x98   :  { %v96_v39 = vpop.xlane.xlu0 %95  ;;  %v221_v53 = vmul.f32 1.442695, %v144_v38 }
  0x99   :  { %v189_v54 = vmul.f32 1.442695, %v96_v39  ;;  %v834_v39 = vsub.s32 %v348_v22, %v798_v5 }
  0x9a   :  { %532 = vpow2.f32 %v221_v53 }
  0x9b   :  { %v147_v40 = vpop.xlane.xlu1 %146  ;;  %534 = vpow2.f32 %v189_v54  ;;  %v397_v54 = vadd.s32 4294967200, %v796_v3 }
  0x9c   :  { %v99_v41 = vpop.xlane.xlu0 %98  ;;  %v223_v55 = vmul.f32 1.442695, %v147_v40  ;;  %v376_v40 = vadd.s32 4294967224, %v796_v3 }
  0x9d   :  { %v191_v56 = vmul.f32 1.442695, %v99_v41 }
  0x9e   :  { %536 = vpow2.f32 %v223_v55 }
  0x9f   :  { %v150_v42 = vpop.xlane.xlu1 %149  ;;  %538 = vpow2.f32 %v191_v56  ;;  %v808_v16 = vpop.eup %524  ;;  %v850_v56 = vsub.s32 %v376_v40, %v798_v5 }
  0xa0   :  { %v102_v43 = vpop.xlane.xlu0 %101  ;;  %v225_v60 = vmul.f32 1.442695, %v150_v42  ;;  %v815_v20 = vpop.eup %526 }
  0xa1   :  { %v193_v61 = vmul.f32 1.442695, %v102_v43  ;;  %v383_v43 = vadd.s32 4294967216, %v796_v3  ;;  %v250_v9 = vmul.f32 %v815_v20, %v806_v14 }
  0xa2   :  { %540 = vpow2.f32 %v225_v60 }
  0xa3   :  { %v153_v44 = vpop.xlane.xlu1 %152  ;;  %542 = vpow2.f32 %v193_v61  ;;  %v529_v24 = vpop.eup %528  ;;  %v855_v60 = vsub.s32 %v383_v43, %v798_v5  ;;  %v319_v32 = vrot.slane %v250_v9, %v812_v17 }
  0xa4   :  { %v105_v1 = vpop.xlane.xlu0 %104  ;;  %v227_v62 = vmul.f32 1.442695, %v153_v44  ;;  %v531_v30 = vpop.eup %530  ;;  %v390_v44 = vadd.s32 4294967208, %v796_v3  ;;  %v267_v10 = vmul.f32 %v529_v24, %v806_v14 }
  0xa5   :  { %v195_v63 = vmul.f32 1.442695, %v105_v1 }
  0xa6   :  { %544 = vpow2.f32 %v227_v62  ;;  %v858_v61 = vsub.s32 %v390_v44, %v798_v5 }
  0xa7   :  { %v156_v45 = vpop.xlane.xlu1 %155  ;;  %546 = vpow2.f32 %v195_v63  ;;  %v533_v34 = vpop.eup %532 }
  0xa8   :  { %v108_v46 = vpop.xlane.xlu0 %107  ;;  %v229_v4 = vmul.f32 1.442695, %v156_v45  ;;  %v535_v38 = vpop.eup %534  ;;  %v268_v18 = vmul.f32 %v533_v34, %v806_v14 }
  0xa9   :  { %v197_v6 = vmul.f32 1.442695, %v108_v46 }
  0xaa   :  { %548 = vpow2.f32 %v229_v4  ;;  %v266_v4 = vmul.f32 %v808_v16, %v806_v14 }
  0xab   :  { %v159_v51 = vpop.xlane.xlu1 %158  ;;  %550 = vpow2.f32 %v197_v6  ;;  %v537_v42 = vpop.eup %536 }
  0xac   :  { %v111_v52 = vpop.xlane.xlu0 %110  ;;  %v231_v8 = vmul.f32 1.442695, %v159_v51  ;;  %v539_v47 = vpop.eup %538 }
  0xad   :  { %v199_v11 = vmul.f32 1.442695, %v111_v52  ;;  %v846_v52 = vsub.s32 %v369_v36, %v798_v5  ;;  %v253_v34 = vmul.f32 %v539_v47, %v806_v14 }
  0xae   :  { %552 = vpow2.f32 %v231_v8 }
  0xaf   :  { %v162_v57 = vpop.xlane.xlu1 %161  ;;  %554 = vpow2.f32 %v199_v11  ;;  %v541_v51 = vpop.eup %540  ;;  %v867_v11 = vsub.s32 %v397_v54, %v798_v5  ;;  %v338_v54 = vrot.slane %v253_v34, %v825_v26 }
  0xb0   :  { %v114_v58 = vpop.xlane.xlu0 %113  ;;  %v233_v15 = vmul.f32 1.442695, %v162_v57  ;;  %v543_v55 = vpop.eup %542  ;;  %v404_v57 = vadd.s32 4294967192, %v796_v3  ;;  %v270_v36 = vmul.f32 %v541_v51, %v806_v14 }
  0xb1   :  { %v201_v19 = vmul.f32 1.442695, %v114_v58  ;;  %v411_v58 = vadd.s32 4294967184, %v796_v3 }
  0xb2   :  { %556 = vpow2.f32 %v233_v15 }
  0xb3   :  { %v165_v0 = vpop.xlane.xlu1 %164  ;;  %558 = vpow2.f32 %v201_v19  ;;  %v545_v59 = vpop.eup %544  ;;  %v874_v15 = vsub.s32 %v411_v58, %v798_v5  ;;  %v252_v19 = vmul.f32 %v535_v38, %v806_v14  ;;  %v254_v38 = vmul.f32 %v543_v55, %v806_v14 }
  0xb4   :  { %v117_v2 = vpop.xlane.xlu0 %116  ;;  %v235_v23 = vmul.f32 1.442695, %v165_v0  ;;  %v418_v0 = vadd.s32 4294967176, %v796_v3  ;;  %v271_v40 = vmul.f32 %v545_v59, %v806_v14 }
  0xb5   :  { %v203_v27 = vmul.f32 1.442695, %v117_v2  ;;  %v547_v2 = vpop.eup %546  ;;  %v345_v59 = vrot.slane %v254_v38, %v830_v35 }
  0xb6   :  { %560 = vpow2.f32 %v235_v23  ;;  %v879_v23 = vsub.s32 %v418_v0, %v798_v5  ;;  %v255_v43 = vmul.f32 %v547_v2, %v806_v14 }
  0xb7   :  { %v168_v12 = vpop.xlane.xlu1 %167  ;;  %562 = vpow2.f32 %v203_v27  ;;  %v549_v8 = vpop.eup %548  ;;  %v428_v27 = vrot.slane %v266_v4, %v812_v17  ;;  %v331_v17 = vrot.slane %v252_v19, %v822_v25 }
  0xb8   :  { %v120_v13 = vpop.xlane.xlu0 %119  ;;  %v237_v33 = vmul.f32 1.442695, %v168_v12  ;;  %v551_v3 = vpop.eup %550  ;;  %v251_v12 = vmul.f32 %v531_v30, %v806_v14  ;;  %v352_v2 = vrot.slane %v255_v43, %v834_v39 }
  0xb9   :  { %v205_v37 = vmul.f32 1.442695, %v120_v13  ;;  %v871_v13 = vsub.s32 %v404_v57, %v798_v5  ;;  %v256_v55 = vmul.f32 %v551_v3, %v806_v14 }
  0xba   :  { %564 = vpow2.f32 %v237_v33  ;;  %v432_v33 = vrot.slane %v267_v10, %v818_v21  ;;  %v324_v5 = vrot.slane %v251_v12, %v818_v21  ;;  %v272_v21 = vmul.f32 %v549_v8, %v806_v14 }
  0xbb   :  { %v171_v28 = vpop.xlane.xlu1 %170  ;;  %566 = vpow2.f32 %v205_v37  ;;  %v553_v16 = vpop.eup %552 }
  0xbc   :  { %v123_v29 = vpop.xlane.xlu0 %122  ;;  %v239_v41 = vmul.f32 1.442695, %v171_v28  ;;  %v555_v24 = vpop.eup %554  ;;  %v269_v28 = vmul.f32 %v537_v42, %v806_v14  ;;  %v437_v42 = vrot.slane %v268_v18, %v822_v25  ;;  %v447_v25 = vrot.slane %v270_v36, %v830_v35 }
  0xbd   :  { %v207_v1 = vmul.f32 1.442695, %v123_v29  ;;  %v326_v58 = vsel %vm325_vm1, %v324_v5, %v319_v32  ;;  %v457_v35 = vrot.slane %v272_v21, %v840_v48  ;;  %v257_v8 = vmul.f32 %v555_v24, %v806_v14 }
  0xbe   :  { %568 = vpow2.f32 %v239_v41 }
  0xbf   :  { %v174_v45 = vpop.xlane.xlu1 %173  ;;  %570 = vpow2.f32 %v207_v1  ;;  %v557_v31 = vpop.eup %556  ;;  %v366_v32 = vrot.slane %v257_v8, %v843_v49 }
  0xc0   :  { %v126_v46 = vpop.xlane.xlu0 %125  ;;  %v241_v50 = vmul.f32 1.442695, %v174_v45  ;;  %v559_v37 = vpop.eup %558  ;;  %v274_v12 = vmul.f32 %v557_v31, %v806_v14 }
  0xc1   :  { %v209_v53 = vmul.f32 1.442695, %v126_v46  ;;  %v442_v46 = vrot.slane %v269_v28, %v825_v26  ;;  %v273_v26 = vmul.f32 %v553_v16, %v806_v14 }
  0xc2   :  { %572 = vpow2.f32 %v241_v50 }
  0xc3   :  { %v177_v62 = vpop.xlane.xlu1 %176  ;;  %574 = vpow2.f32 %v209_v53  ;;  %v561_v41 = vpop.eup %560  ;;  %v433_v53 = vsel %vm325_vm1, %v432_v33, %v428_v27  ;;  %v462_v28 = vrot.slane %v273_v26, %v843_v49 }
  0xc4   :  { %v129_v63 = vpop.xlane.xlu0 %128  ;;  %v243_v6 = vmul.f32 1.442695, %v177_v62  ;;  %v563_v45 = vpop.eup %562  ;;  %v452_v62 = vrot.slane %v271_v40, %v834_v39  ;;  %v438_v0 = vsel %vm332_vm2, %v437_v42, %v433_v53  ;;  %v359_v39 = vrot.slane %v256_v55, %v840_v48 }
  0xc5   :  { %v211_v7 = vmul.f32 1.442695, %v129_v63  ;;  %v259_v48 = vmul.f32 %v563_v45, %v806_v14 }
  0xc6   :  { %576 = vpow2.f32 %v243_v6  ;;  %v333_v6 = vsel %vm332_vm2, %v331_v17, %v326_v58 }
  0xc7   :  { %578 = vpow2.f32 %v211_v7  ;;  %v180_v20 = vpop.xlane.xlu1 %179  ;;  %v565_v51 = vpop.eup %564  ;;  %v443_v7 = vsel %vm339_vm3, %v442_v46, %v438_v0  ;;  %v340_v10 = vsel %vm339_vm3, %v338_v54, %v333_v6 }
  0xc8   :  { %v132_v22 = vpop.xlane.xlu0 %131  ;;  %v245_v29 = vmul.f32 1.442695, %v180_v20  ;;  %v567_v57 = vpop.eup %566  ;;  %v448_v3 = vsel %vm346_vm4, %v447_v25, %v443_v7  ;;  %v347_v18 = vsel %vm346_vm4, %v345_v59, %v340_v10  ;;  %v258_v20 = vmul.f32 %v559_v37, %v806_v14 }
  0xc9   :  { %v213_v30 = vmul.f32 1.442695, %v132_v22  ;;  %v453_v19 = vsel %vm353_vm5, %v452_v62, %v448_v3  ;;  %v275_v22 = vmul.f32 %v561_v41, %v806_v14  ;;  %v354_v27 = vsel %vm353_vm5, %v352_v2, %v347_v18 }
  0xca   :  { %580 = vpow2.f32 %v245_v29  ;;  %v276_v29 = vmul.f32 %v565_v51, %v806_v14  ;;  %v458_v31 = vsel %vm360_vm6, %v457_v35, %v453_v19  ;;  %v260_v33 = vmul.f32 %v567_v57, %v806_v14 }
  0xcb   :  { %582 = vpow2.f32 %v213_v30  ;;  %v183_v44 = vpop.xlane.xlu1 %182  ;;  %v569_v63 = vpop.eup %568  ;;  %v361_v36 = vsel %vm360_vm6, %v359_v39, %v354_v27  ;;  %v467_v37 = vrot.slane %v274_v12, %v846_v52  ;;  %v373_v40 = vrot.slane %v258_v20, %v846_v52 }
  0xcc   :  { %v135_v1 = vpop.xlane.xlu0 %134  ;;  %v247_v47 = vmul.f32 1.442695, %v183_v44  ;;  %v571_v4 = vpop.eup %570  ;;  %v277_v34 = vmul.f32 %v569_v63, %v806_v14  ;;  %v472_v41 = vrot.slane %v275_v22, %v850_v56  ;;  %v463_v43 = vsel %vm367_vm7, %v462_v28, %v458_v31 }
  0xcd   :  { %v215_v50 = vmul.f32 1.442695, %v135_v1  ;;  %v261_v5 = vmul.f32 %v571_v4, %v806_v14  ;;  %v380_v44 = vrot.slane %v259_v48, %v850_v56  ;;  %v477_v1 = vrot.slane %v276_v29, %v855_v60 }
  0xce   :  { %584 = vpow2.f32 %v247_v47  ;;  %v368_v21 = vsel %vm367_vm7, %v366_v32, %v361_v36  ;;  %v387_v52 = vrot.slane %v260_v33, %v855_v60  ;;  %v482_v47 = vrot.slane %v277_v34, %v858_v61 }
  0xcf   :  { %586 = vpow2.f32 %v215_v50  ;;  %v573_v9 = vpop.eup %572  ;;  %v394_v51 = vrot.slane %v261_v5, %v858_v61  ;;  %v468_v54 = vsel %vm374_vm8, %v467_v37, %v463_v43  ;;  %v375_v25 = vsel %vm374_vm8, %v373_v40, %v368_v21 }
  0xd0   :  { %v575_v16 = vpop.eup %574  ;;  %v278_v38 = vmul.f32 %v573_v9, %v806_v14  ;;  %v473_v57 = vsel %vm381_vm9, %v472_v41, %v468_v54  ;;  %v382_v59 = vsel %vm381_vm9, %v380_v44, %v375_v25 }
  0xd1   :  { %v262_v42 = vmul.f32 %v575_v16, %v806_v14  ;;  %v478_v61 = vsel %vm388_vm10, %v477_v1, %v473_v57  ;;  %v389_v26 = vsel %vm388_vm10, %v387_v52, %v382_v59 }
  0xd2   :  { %v487_v56 = vrot.slane %v278_v38, %v867_v11  ;;  %v483_v4 = vsel %vm395_vm11, %v482_v47, %v478_v61  ;;  %v396_v7 = vsel %vm395_vm11, %v394_v51, %v389_v26 }
  0xd3   :  { %v577_v24 = vpop.eup %576  ;;  %v401_v55 = vrot.slane %v262_v42, %v867_v11 }
  0xd4   :  { %v579_v30 = vpop.eup %578  ;;  %v279_v49 = vmul.f32 %v577_v24, %v806_v14 }
  0xd5   :  { %v263_v45 = vmul.f32 %v579_v30, %v806_v14  ;;  %v403_v35 = vsel %vm402_vm12, %v401_v55, %v396_v7 }
  0xd6   :  { %v492_v60 = vrot.slane %v279_v49, %v871_v13 }
  0xd7   :  { %v581_v17 = vpop.eup %580  ;;  %v408_v62 = vrot.slane %v263_v45, %v871_v13  ;;  %v488_v13 = vsel %vm402_vm12, %v487_v56, %v483_v4 }
  0xd8   :  { %v583_v46 = vpop.eup %582  ;;  %v280_v50 = vmul.f32 %v581_v17, %v806_v14  ;;  %v493_v8 = vsel %vm409_vm13, %v492_v60, %v488_v13 }
  0xd9   :  { %v264_v53 = vmul.f32 %v583_v46, %v806_v14  ;;  %v410_v10 = vsel %vm409_vm13, %v408_v62, %v403_v35 }
  0xda   :  { %v497_v63 = vrot.slane %v280_v50, %v874_v15 }
  0xdb   :  { %v585_v58 = vpop.eup %584  ;;  %v415_v11 = vrot.slane %v264_v53, %v874_v15 }
  0xdc   :  { %v587_v0 = vpop.eup %586  ;;  %v281_v2 = vmul.f32 %v585_v58, %v806_v14  ;;  %v498_v3 = vsel %vm416_vm14, %v497_v63, %v493_v8 }
  0xdd   :  { %v265_v6 = vmul.f32 %v587_v0, %v806_v14  ;;  %v417_v14 = vsel %vm416_vm14, %v415_v11, %v410_v10 }
  0xde   :  { %v502_v9 = vrot.slane %v281_v2, %v879_v23 }
  0xdf   :  { %v422_v15 = vrot.slane %v265_v6, %v879_v23 }
  0xe0   :  { %v503_v39 = vsel %vm423_vm15, %v502_v9, %v498_v3 }
  0xe1   :  { %v424_v12 = vsel %vm423_vm15, %v422_v15, %v417_v14 }
  0xe2   :  { %v505_v16 = vsel %vm504_vm0, %v503_v39, %v424_v12 }
  0xe3   :  { %507 = vst [vmem:[#allocation3] sm:$0x3] %v505_v16 }
  0xe4   :  { %599 = shalt.err (!%p596_p4)
}
  0xe5   :  { %517 = dma.vmem_to_hbm [thread:$0]  %s515_s22, 32, %s973_s3, [#allocation4]  }
  0xe6   :  { %608 = dma.done.wait [#allocation4], 32  }
  0xe7   :  { %609 = vsyncadd [#allocation4], 4294967264 }
  0xe8   :  { %521 = vsyncpa [#allocation4], 1 }

</bundles_post_ra>
